<compile_context>
chip_gen: v7x
topology: tpu7x:2x2x1
jax: 0.10.0
libtpu: 0.0.40
codegen_flags: <defaults>
</compile_context>

<pallas_src>
from functools import partial

import numpy as np
import jax
import jax.numpy as jnp
from jax import lax
from jax.experimental import pallas as pl
from jax.experimental.pallas import tpu as pltpu


_TARGET_BLOCK_ELEMS = 1 << 20      # ~4 MiB f32 per stream per grid step
_TARGET_CHUNK_ELEMS = 1 << 16      # ~256 KiB f32 of live temporaries per fold step
_MAX_LANES = 4096
_SUBLANE_MULT = 32                 # covers int8 (32,128) / bf16 (16,128) / f32 (8,128)
_VMEM_LIMIT = 48 * 1024 * 1024     # safe on v7x (64 MiB/TC) and v5e/v6e (128 MiB)


def _num_tensorcores():
    """Best-effort TensorCore count (2 on v7x-style chips, else 1)."""
    # TODO(synk): on v7x, plain "parallel" semantics may not shard across both
    # TCs; pltpu.CORE_PARALLEL / pl.core_map would guarantee it but needs HW
    # validation, so we stay with the proven "parallel" axis here.
    try:
        info = pltpu.get_tpu_info()
        for name in ("num_cores", "core_count", "num_tensorcores",
                     "tensorcore_count"):
            v = getattr(info, name, None)
            if v:
                return max(1, min(2, int(v)))
    except Exception:
        pass
    try:
        dev = jax.devices()[0]
        for name in ("num_cores", "core_count"):
            v = getattr(dev, name, None)
            if v:
                return max(1, min(2, int(v)))
    except Exception:
        pass
    return 1


def _pick_lanes(T):
    """Largest multiple of 128 (<= 4096) dividing T -> zero-copy reshape."""
    for k in range(_MAX_LANES // 128, 0, -1):
        lanes = 128 * k
        if T % lanes == 0:
            return lanes, 0
    lanes = 512
    return lanes, T % lanes        # ragged tail handled in plain JAX


def _jax_sums(labels, pred, weights, *, pred_is_bool, logit_t, ignore_idx):
    """Plain-JAX weighted TP/FP sums (used for the small ragged tail)."""
    if pred_is_bool:
        pred_true = pred != 0
    else:
        pred_true = pred.astype(jnp.float32) > logit_t
    if weights is None:
        w = (labels != ignore_idx).astype(jnp.float32)
    else:
        w = weights.astype(jnp.float32)
    tp = jnp.sum(w * ((labels == 1) & pred_true).astype(jnp.float32))
    fp = jnp.sum(w * ((labels == 0) & pred_true).astype(jnp.float32))
    return tp, fp


def _make_kernel(*, pred_is_bool, logit_t, has_weights, ignore_idx,
                 G, G_per, BR, CH, FR, LANES, R, n_chunks, need_mask):
    """Kernel accumulating weighted TP/FP partials into a (1,2,FR,LANES) block."""

    def kernel(*refs):
        labels_ref = refs[0]
        pred_ref = refs[1]
        w_ref = refs[2] if has_weights else None
        out_ref = refs[-1]

        c = pl.program_id(0)          # TensorCore shard ("parallel")
        j = pl.program_id(1)          # reduction step ("arbitrary")

        @pl.when(j == 0)
        def _init():
            out_ref[...] = jnp.zeros_like(out_ref)

        blk = c * G_per + j           # logical row-block id (may be clamped)

        def chunk(r0):
            sl = pl.ds(r0, CH)
            lab = labels_ref[sl, :]
            if pred_is_bool:
                pred_true = pred_ref[sl, :] != 0
            else:
                pred_true = pred_ref[sl, :].astype(jnp.float32) > logit_t
            if has_weights:
                w = w_ref[sl, :].astype(jnp.float32)
            else:
                w = (lab != ignore_idx).astype(jnp.float32)
            if need_mask:
                # Zero rows that belong to a partial / duplicated (clamped) block.
                row0 = jnp.minimum(blk, G - 1) * BR + r0
                rows = row0 + lax.broadcasted_iota(jnp.int32, (CH, 1), 0)
                valid = (rows < R) & (blk < G)
                w = jnp.where(valid, w, 0.0)
            tp = w * ((lab == 1) & pred_true).astype(jnp.float32)
            fp = w * ((lab == 0) & pred_true).astype(jnp.float32)
            # Fold sublane groups: (CH, LANES) -> (CH//FR, FR, LANES) -> (FR, LANES)
            # (pure vreg-wise VPU adds, no cross-lane work).
            out_ref[0, 0] += tp.reshape(CH // FR, FR, LANES).sum(axis=0)
            out_ref[0, 1] += fp.reshape(CH // FR, FR, LANES).sum(axis=0)

        if n_chunks == 1:
            chunk(0)
        else:
            def body(i, carry):
                chunk(pl.multiple_of(i * CH, CH))
                return carry
            lax.fori_loop(0, n_chunks, body, 0, unroll=n_chunks <= 8)

    return kernel


def _precision_sums(labels_flat, pred_flat, weights_flat, *, ignore_idx,
                    pred_is_bool, logit_t):
    """Weighted (true_positives, false_positives) sums via a Pallas scan."""
    T = int(labels_flat.shape[0])
    lanes, tail = _pick_lanes(T)
    T_main = T - tail
    R = T_main // lanes

    tp = jnp.float32(0.0)
    fp = jnp.float32(0.0)

    if R > 0:
        if R < _SUBLANE_MULT:
            # Tiny input: one full-extent block (always layout-legal).
            BR = CH = FR = R
            n_chunks = 1
        else:
            FR = 8
            R_al = (R // _SUBLANE_MULT) * _SUBLANE_MULT
            CH = max(_SUBLANE_MULT,
                     (_TARGET_CHUNK_ELEMS // lanes) // _SUBLANE_MULT * _SUBLANE_MULT)
            CH = min(CH, R_al)
            BR_rows = min(_TARGET_BLOCK_ELEMS // lanes, R_al)
            BR = max(CH, (BR_rows // CH) * CH)
            n_chunks = BR // CH

        G = pl.cdiv(R, BR)
        NC = min(_num_tensorcores(), G) if G > 1 else 1
        G_per = pl.cdiv(G, NC)
        need_mask = (R % BR != 0) or (NC * G_per != G)

        def _view(x):
            if tail:
                # TODO(synk): prefix slice may force one copy when no 128-multiple
                # divides T; the common aligned case is a zero-copy reshape.
                x = x[:T_main]
            return x.reshape(R, lanes)

        args = [_view(labels_flat), _view(pred_flat)]
        if weights_flat is not None:
            args.append(_view(weights_flat))

        kernel = _make_kernel(
            pred_is_bool=pred_is_bool, logit_t=logit_t,
            has_weights=weights_flat is not None, ignore_idx=ignore_idx,
            G=G, G_per=G_per, BR=BR, CH=CH, FR=FR, LANES=lanes, R=R,
            n_chunks=n_chunks, need_mask=need_mask)

        def in_map(c, j):
            # Clamp so duplicated blocks (when NC*G_per > G) never read OOB;
            # they are fully masked inside the kernel.
            return (jnp.minimum(c * G_per + j, G - 1), 0)

        in_specs = [pl.BlockSpec((BR, lanes), in_map) for _ in args]
        out_spec = pl.BlockSpec((1, 2, FR, lanes), lambda c, j: (c, 0, 0, 0))

        in_bytes = sum(int(np.prod(a.shape)) * a.dtype.itemsize for a in args)
        out_bytes = NC * 2 * FR * lanes * 4

        out = pl.pallas_call(
            kernel,
            out_shape=jax.ShapeDtypeStruct((NC, 2, FR, lanes), jnp.float32),
            grid=(NC, G_per),
            in_specs=in_specs,
            out_specs=out_spec,
            compiler_params=pltpu.CompilerParams(
                dimension_semantics=("parallel", "arbitrary"),
                vmem_limit_bytes=_VMEM_LIMIT),
            cost_estimate=pl.CostEstimate(
                flops=10 * NC * G_per * BR * lanes, transcendentals=0,
                bytes_accessed=in_bytes + out_bytes),
        )(*args)

        tp = jnp.sum(out[:, 0])
        fp = jnp.sum(out[:, 1])

    if tail or R == 0:
        tp_t, fp_t = _jax_sums(
            labels_flat[T_main:], pred_flat[T_main:],
            None if weights_flat is None else weights_flat[T_main:],
            pred_is_bool=pred_is_bool, logit_t=logit_t, ignore_idx=ignore_idx)
        tp = tp + tp_t
        fp = fp + fp_t

    return tp, fp


@partial(jax.jit, static_argnames=("dim", "ignore_idx", "threshold"))
def _precision_counts(labels, preds, weights, *, dim, ignore_idx, threshold):
    """Pure (jitted) count path: returns weighted (TP, FP) sums."""
    if preds.shape[dim] == 1:
        # sigmoid(p) > t  <=>  p > logit(t); raw (possibly bf16) scores are fed
        # directly and compared in-register inside the kernel.
        pred_stream = jnp.squeeze(preds, axis=dim).reshape(-1)
        pred_is_bool = False
        logit_t = float(np.log(threshold) - np.log1p(-threshold))
    else:
        assert preds.shape[dim] == 2, 'precision only support 2 class'
        p0 = jnp.take(preds, 0, axis=dim)
        p1 = jnp.take(preds, 1, axis=dim)
        # Single fused XLA pass: reads preds once, writes a 1 B/elem stream.
        # Strict '>' matches torch.max tie-breaking (ties -> class 0).
        pred_stream = (p1 > p0).astype(jnp.int8).reshape(-1)
        pred_is_bool = True
        logit_t = 0.0

    labels_flat = labels.reshape(-1)            # native dtype (int8 OK, no upcast)
    weights_flat = None if weights is None else weights.reshape(-1)

    return _precision_sums(labels_flat, pred_stream, weights_flat,
                           ignore_idx=ignore_idx, pred_is_bool=pred_is_bool,
                           logit_t=logit_t)


class PrecisionPallas:
    """JAX/Pallas port of the PyTorch `Precision` nn.Module."""

    def __init__(self, dim=1, ignore_idx=-1, threshold=0.5):
        # registered buffers (deterministic init, matching torch)
        self.total = jnp.zeros((1,), jnp.float32)
        self.count = jnp.zeros((1,), jnp.float32)
        self._ignore_idx = ignore_idx
        self._dim = dim
        self._threshold = threshold

    def forward(self, labels, preds, weights=None):
        tp, fp = _precision_counts(labels, preds, weights,
                                   dim=self._dim,
                                   ignore_idx=self._ignore_idx,
                                   threshold=float(self._threshold))

        # `if count > 0:` branch of the torch module, done data-dependently.
        cnt = tp + fp
        upd = cnt > 0
        self.count = jnp.where(upd, self.count + cnt, self.count)
        self.total = jnp.where(upd, self.total + tp, self.total)
        # TODO(synk): torch returns `.cpu()` and mutates registered buffers;
        # this attribute-based state will not accumulate correctly under jit.
        return self.value

    @property
    def value(self):
        return self.total / self.count


if __name__ == "__main__":
    key = jax.random.PRNGKey(0)
    k1, k2, k3, k4, k5, k6, k7 = jax.random.split(key, 7)
    N, C, H, W = 2, 2, 16, 16

    # labels in {-1 (ignored), 0, 1}
    labels = jax.random.randint(k1, (N, H, W), -1, 2)
    preds = jax.random.normal(k2, (N, C, H, W), jnp.float32)
    lab2 = labels.reshape(N, -1)

    # --- two-class path, no weights, int32 labels -------------------------
    metric = PrecisionPallas(dim=1, ignore_idx=-1, threshold=0.5)
    val = jax.block_until_ready(metric.forward(labels, preds))

    pred_labels = jnp.argmax(preds, axis=1).reshape(N, -1)
    w = (lab2 != -1).astype(jnp.float32)
    tp_ref = jnp.sum(w * ((lab2 == 1) & (pred_labels == 1)))
    fp_ref = jnp.sum(w * ((lab2 == 0) & (pred_labels == 1)))
    ref = tp_ref / (tp_ref + fp_ref)
    assert jnp.allclose(val[0], ref, atol=1e-6), (val, ref)

    # --- sigmoid (1-channel) path, weights, bf16 preds, int8 labels -------
    preds1 = jax.random.normal(k3, (N, 1, H, W), jnp.float32).astype(jnp.bfloat16)
    weights = jax.random.uniform(k4, (N, H, W), dtype=jnp.float32)
    metric2 = PrecisionPallas(dim=1, ignore_idx=-1, threshold=0.5)
    val2 = jax.block_until_ready(
        metric2.forward(labels.astype(jnp.int8), preds1, weights))

    p = jax.nn.sigmoid(preds1.astype(jnp.float32)).reshape(N, -1)
    pl2 = p > 0.5
    w2 = weights.reshape(N, -1)
    tp2 = jnp.sum(w2 * ((lab2 == 1) & pl2))
    fp2 = jnp.sum(w2 * ((lab2 == 0) & pl2))
    ref2 = tp2 / (tp2 + fp2)
    assert jnp.allclose(val2[0], ref2, rtol=1e-5, atol=1e-5), (val2, ref2)

    # --- two-class path, weights, shape exercising partial-block masking ---
    N3, H3, W3 = 2, 33, 2048
    labels3 = jax.random.randint(k5, (N3, H3, W3), -1, 2)
    preds3 = jax.random.normal(k6, (N3, C, H3, W3), jnp.float32)
    weights3 = jax.random.uniform(k7, (N3, H3, W3), dtype=jnp.float32)
    metric3 = PrecisionPallas(dim=1, ignore_idx=-1, threshold=0.5)
    val3 = jax.block_until_ready(metric3.forward(labels3, preds3, weights3))

    lab3 = labels3.reshape(N3, -1)
    pl3 = jnp.argmax(preds3, axis=1).reshape(N3, -1) == 1
    w3 = weights3.reshape(N3, -1)
    tp3 = jnp.sum(w3 * ((lab3 == 1) & pl3))
    fp3 = jnp.sum(w3 * ((lab3 == 0) & pl3))
    ref3 = tp3 / (tp3 + fp3)
    assert jnp.allclose(val3[0], ref3, rtol=1e-5, atol=1e-5), (val3, ref3)

    print("KERNEL_OK")
</pallas_src>

<mosaic_0001>
module attributes {stable_mosaic.version = 11 : i64} {
  func.func @kernel(%arg0: i32, %arg1: i32, %arg2: memref<1x512xi32, #tpu.memory_space<vmem>>, %arg3: memref<1x512xi8, #tpu.memory_space<vmem>>, %arg4: memref<1x2x1x512xf32, #tpu.memory_space<vmem>>) attributes {dimension_semantics = [#tpu.dimension_semantics<parallel>, #tpu.dimension_semantics<arbitrary>], iteration_bounds = array<i64: 1, 1>, scalar_prefetch = 0 : i64, scratch_operands = 0 : i64, tpu.core_type = #tpu.core_type<tc>, window_params = [{transform_indices = @transform_0, window_bounds = array<i64: 1, 512>}, {transform_indices = @transform_1, window_bounds = array<i64: 1, 512>}, {transform_indices = @transform_2, window_bounds = array<i64: 1, 2, 1, 512>}]} {
    %c0_i32 = arith.constant 0 : i32
    %0 = arith.cmpi eq, %arg1, %c0_i32 : i32
    %1 = arith.extui %0 : i1 to i32
    %c0_i32_0 = arith.constant 0 : i32
    %2 = arith.cmpi ne, %1, %c0_i32_0 : i32
    scf.if %2 {
      %cst_21 = arith.constant 0.000000e+00 : f32
      %39 = vector.broadcast %cst_21 : f32 to vector<1x2x1x512xf32>
      %c0_22 = arith.constant 0 : index
      %c0_23 = arith.constant 0 : index
      %c0_24 = arith.constant 0 : index
      %c0_25 = arith.constant 0 : index
      %40 = vector.load %arg4[%c0_22, %c0_23, %c0_24, %c0_25] : memref<1x2x1x512xf32, #tpu.memory_space<vmem>>, vector<1x2x1x512xf32>
      tpu.vector_store %arg4[%c0_22, %c0_23, %c0_24, %c0_25], %39 {strides = array<i32>} : memref<1x2x1x512xf32, #tpu.memory_space<vmem>>, vector<1x2x1x512xf32>,
    } else {
    }
    %c0 = arith.constant 0 : index
    %c0_1 = arith.constant 0 : index
    %3 = vector.load %arg2[%c0, %c0_1] : memref<1x512xi32, #tpu.memory_space<vmem>>, vector<1x512xi32>
    %c0_2 = arith.constant 0 : index
    %c0_3 = arith.constant 0 : index
    %4 = vector.load %arg3[%c0_2, %c0_3] : memref<1x512xi8, #tpu.memory_space<vmem>>, vector<1x512xi8>
    %c0_i8 = arith.constant 0 : i8
    %5 = vector.broadcast %c0_i8 : i8 to vector<1x512xi8>
    %6 = arith.cmpi ne, %4, %5 : vector<1x512xi8>
    %c-1_i32 = arith.constant -1 : i32
    %7 = vector.broadcast %c-1_i32 : i32 to vector<1x512xi32>
    %8 = arith.cmpi ne, %3, %7 : vector<1x512xi32>
    %9 = arith.extui %8 : vector<1x512xi1> to vector<1x512xi32>
    %10 = arith.sitofp %9 : vector<1x512xi32> to vector<1x512xf32>
    %c1_i32 = arith.constant 1 : i32
    %11 = vector.broadcast %c1_i32 : i32 to vector<1x512xi32>
    %12 = arith.cmpi eq, %3, %11 : vector<1x512xi32>
    %13 = arith.andi %12, %6 : vector<1x512xi1>
    %14 = arith.extui %13 : vector<1x512xi1> to vector<1x512xi32>
    %15 = arith.sitofp %14 : vector<1x512xi32> to vector<1x512xf32>
    %16 = arith.mulf %10, %15 : vector<1x512xf32>
    %c0_i32_4 = arith.constant 0 : i32
    %17 = vector.broadcast %c0_i32_4 : i32 to vector<1x512xi32>
    %18 = arith.cmpi eq, %3, %17 : vector<1x512xi32>
    %19 = arith.andi %18, %6 : vector<1x512xi1>
    %20 = arith.extui %19 : vector<1x512xi1> to vector<1x512xi32>
    %21 = arith.sitofp %20 : vector<1x512xi32> to vector<1x512xf32>
    %22 = arith.mulf %10, %21 : vector<1x512xf32>
    %c0_5 = arith.constant 0 : index
    %c0_6 = arith.constant 0 : index
    %c0_7 = arith.constant 0 : index
    %c0_8 = arith.constant 0 : index
    %23 = vector.load %arg4[%c0_5, %c0_6, %c0_7, %c0_8] : memref<1x2x1x512xf32, #tpu.memory_space<vmem>>, vector<1x1x1x512xf32>
    %24 = vector.shape_cast %23 : vector<1x1x1x512xf32> to vector<1x512xf32>
    %25 = vector.shape_cast %16 : vector<1x512xf32> to vector<1x1x512xf32>
    %cst = arith.constant dense<0.000000e+00> : vector<1x512xf32>
    %26 = vector.multi_reduction <add>, %25, %cst [0] : vector<1x1x512xf32> to vector<1x512xf32>
    %27 = arith.addf %24, %26 : vector<1x512xf32>
    %c0_9 = arith.constant 0 : index
    %c0_10 = arith.constant 0 : index
    %c0_11 = arith.constant 0 : index
    %c0_12 = arith.constant 0 : index
    %28 = vector.load %arg4[%c0_9, %c0_10, %c0_11, %c0_12] : memref<1x2x1x512xf32, #tpu.memory_space<vmem>>, vector<1x1x1x512xf32>
    %29 = vector.shape_cast %28 : vector<1x1x1x512xf32> to vector<1x512xf32>
    %30 = vector.shape_cast %27 : vector<1x512xf32> to vector<1x1x1x512xf32>
    tpu.vector_store %arg4[%c0_9, %c0_10, %c0_11, %c0_12], %30 {strides = array<i32>} : memref<1x2x1x512xf32, #tpu.memory_space<vmem>>, vector<1x1x1x512xf32>,
    %c0_13 = arith.constant 0 : index
    %c1 = arith.constant 1 : index
    %c0_14 = arith.constant 0 : index
    %c0_15 = arith.constant 0 : index
    %31 = vector.load %arg4[%c0_13, %c1, %c0_14, %c0_15] : memref<1x2x1x512xf32, #tpu.memory_space<vmem>>, vector<1x1x1x512xf32>
    %32 = vector.shape_cast %31 : vector<1x1x1x512xf32> to vector<1x512xf32>
    %33 = vector.shape_cast %22 : vector<1x512xf32> to vector<1x1x512xf32>
    %cst_16 = arith.constant dense<0.000000e+00> : vector<1x512xf32>
    %34 = vector.multi_reduction <add>, %33, %cst_16 [0] : vector<1x1x512xf32> to vector<1x512xf32>
    %35 = arith.addf %32, %34 : vector<1x512xf32>
    %c0_17 = arith.constant 0 : index
    %c1_18 = arith.constant 1 : index
    %c0_19 = arith.constant 0 : index
    %c0_20 = arith.constant 0 : index
    %36 = vector.load %arg4[%c0_17, %c1_18, %c0_19, %c0_20] : memref<1x2x1x512xf32, #tpu.memory_space<vmem>>, vector<1x1x1x512xf32>
    %37 = vector.shape_cast %36 : vector<1x1x1x512xf32> to vector<1x512xf32>
    %38 = vector.shape_cast %35 : vector<1x512xf32> to vector<1x1x1x512xf32>
    tpu.vector_store %arg4[%c0_17, %c1_18, %c0_19, %c0_20], %38 {strides = array<i32>} : memref<1x2x1x512xf32, #tpu.memory_space<vmem>>, vector<1x1x1x512xf32>,
    return
  }
  func.func @transform_0(%arg0: i32, %arg1: i32) -> (i32, i32) {
    %c1_i32 = arith.constant 1 : i32
    %0 = arith.muli %arg0, %c1_i32 : i32
    %1 = arith.addi %0, %arg1 : i32
    %c0_i32 = arith.constant 0 : i32
    %2 = arith.minsi %1, %c0_i32 : i32
    %c0_i32_0 = arith.constant 0 : i32
    %c0_i32_1 = arith.constant 0 : i32
    return %2, %c0_i32_0 : i32, i32
  }
  func.func @transform_1(%arg0: i32, %arg1: i32) -> (i32, i32) {
    %c1_i32 = arith.constant 1 : i32
    %0 = arith.muli %arg0, %c1_i32 : i32
    %1 = arith.addi %0, %arg1 : i32
    %c0_i32 = arith.constant 0 : i32
    %2 = arith.minsi %1, %c0_i32 : i32
    %c0_i32_0 = arith.constant 0 : i32
    %c0_i32_1 = arith.constant 0 : i32
    return %2, %c0_i32_0 : i32, i32
  }
  func.func @transform_2(%arg0: i32, %arg1: i32) -> (i32, i32, i32, i32) {
    %c0_i32 = arith.constant 0 : i32
    %c0_i32_0 = arith.constant 0 : i32
    %c0_i32_1 = arith.constant 0 : i32
    %c0_i32_2 = arith.constant 0 : i32
    return %arg0, %c0_i32, %c0_i32_0, %c0_i32_1 : i32, i32, i32, i32
  }
}

</mosaic_0001>

<bundles_post_ra>
// kernel: _precision_counts.1
= control target key start
LH: loop header
LB: loop body
LE: loop exit
PB: predicated region body
PF: predicated region fallthrough
CT: control target
= control target key end

     0   :  { %v71_v0 = vlaneseq  ;;  %v160_v2 = vmov 1966171168   ;;  %v161_v6 = vmov 0.0   ;;  %v162_v7 = vmov 0   ;;  %s214_s1 = inlined_call_operand.vmem [shape: s8[1,512], index: 1, kind: input, shape index: {}]   ;;  %s215_s2 = inlined_call_operand.vmem [shape: f32[1,2,1,512], index: 2, kind: output, shape index: {}]   ;;  %s216_s0 = inlined_call_operand.vmem [shape: s32[1,512], index: 0, kind: input, shape index: {}]  }
   0x1   :  { %v78_v1 = vld [vmem:[%s214_s1] sm:$0xf]  ;;  %v92_v3 = vunpack.c.l.s4 %v160_v2 }
   0x2   :  { %vm181_vm0 = vcmp.lt.s32.totalorder %v71_v0, 512  ;;  %vm79_vm1 = vnez %v78_v1  ;;  %v95_v5 = vshrl.u32 %v71_v0, 7  ;;  %v77_v17 = vld [vmem:[%s216_s0] sm:$0xf] }
   0x3   :  { %75 = vst.msk [vmem:[%s215_s2] sm:$0xf] %vm181_vm0, %v161_v6  ;;  %v84_v8 = vsel %vm79_vm1, 16843009, %v162_v7  ;;  %v93_v9 = vunpack.c.0.s8 %v92_v3  ;;  %76 = vst.msk [vmem:[%s215_s2 + $0x4] sm:$0xf] %vm181_vm0, %v161_v6 }
   0x4   :  { %v85_v10 = vunpack.c.0.s8 %v84_v8  ;;  %v86_v11 = vunpack.c.1.s8 %v84_v8  ;;  %vm80_vm4 = vcmp.ne.s32.totalorder %v77_v17, 4294967295  ;;  %vm83_vm5 = vcmp.eq.s32.totalorder %v77_v17, 1 }
   0x5   :  { %v96_v12 = vsub.s32 %v93_v9, %v95_v5  ;;  %vm118_vm6 = vcmp.eq.s32.totalorder %v77_v17, 0  ;;  %v152_v20 = vsel %vm80_vm4, 1.0, %v161_v6 }
   0x6   :  { %vm87_vm2 = vcmp.ne.s32.totalorder %v85_v10, 0  ;;  %vm88_vm3 = vcmp.ne.s32.totalorder %v86_v11, 0 }
   0x7   :  { %v89_v13 = vsel %vm87_vm2, 1, %v162_v7  ;;  %v90_v14 = vsel %vm88_vm3, 1, %v162_v7 }
   0x8   :  { %v97_v15 = vrot.slane %v89_v13, %v96_v12  ;;  %v104_v16 = vrot.slane %v90_v14, %v96_v12 }
   0xa   :  { %v105_v18 = vcombine.low %v97_v15, %v104_v16  ;;  %v123_v22 = vld [vmem:[%s215_s2] sm:$0xf]  ;;  %v155_v25 = vld [vmem:[%s215_s2 + $0x4] sm:$0xf] }
   0xc   :  { %v112_v19 = vrot.slane %v105_v18, %v96_v12 }
   0xe   :  { %vm113_vm7 = vcmp.ne.s32.totalorder %v112_v19, 0 }
   0xf   :  { %vm114_vm8 = vmand %vm83_vm5, %vm113_vm7 }
  0x10   :  { %v153_v21 = vsel %vm114_vm8, 1.0, %v161_v6  ;;  %vm119_vm9 = vmand %vm118_vm6, %vm113_vm7 }
  0x11   :  { %v117_v23 = vmul.f32 %v153_v21, %v152_v20  ;;  %v154_v24 = vsel %vm119_vm9, 1.0, %v161_v6 }
  0x12   :  { %v122_v26 = vmul.f32 %v154_v24, %v152_v20 }
  0x13   :  { %v125_v27 = vadd.f32 %v123_v22, %v117_v23 }
  0x14   :  { %v134_v28 = vadd.f32 %v155_v25, %v122_v26 }
  0x15   :  { %130 = vst.msk [vmem:[%s215_s2] sm:$0xf] %vm181_vm0, %v125_v27 }
  0x16   :  { %156 = vst.msk [vmem:[%s215_s2 + $0x4] sm:$0xf] %vm181_vm0, %v134_v28 }

</bundles_post_ra>
